<compile_context>
chip_gen: v7x
topology: tpu7x:2x2x1
jax: 0.10.0
libtpu: 0.0.40
codegen_flags: <defaults>
</compile_context>

<pallas_src>
import functools

import jax
import jax.numpy as jnp
from jax.experimental import pallas as pl
from jax.experimental.pallas import tpu as pltpu


def _round_up(x, m):
    return ((x + m - 1) // m) * m


# -----------------------------------------------------------------------------
# Kernels
# -----------------------------------------------------------------------------
def _biaffine_small_kernel(a_ref, bt_ref, u_ref, o_ref):
    """Whole batch element per grid step: out = (a @ U) @ b^T."""
    au = jnp.dot(a_ref[...], u_ref[...], preferred_element_type=jnp.float32)
    out = jnp.dot(au, bt_ref[...].astype(jnp.float32),
                  preferred_element_type=jnp.float32)
    o_ref[...] = out.astype(o_ref.dtype)


def _biaffine_tiled_kernel(a_ref, bt_ref, u_ref, o_ref, au_ref, *, downcast):
    # a_ref : (tsa, D)   (batch, Sa-tile) slab; index constant along Sb axis
    # bt_ref: (D, tsb)   streamed Sb tile of b^T (innermost grid axis)
    # u_ref : (D, D)     bilinear weight, VMEM-resident for the whole grid
    # o_ref : (tsa, tsb) output tile
    # au_ref: (tsa, D)   f32 scratch holding a @ U, reused across Sb tiles
    @pl.when(pl.program_id(2) == 0)
    def _():
        au_ref[...] = jnp.dot(a_ref[...], u_ref[...],
                              preferred_element_type=jnp.float32)

    au = au_ref[...]
    bt = bt_ref[...]
    if downcast:
        # Opt-in bf16 fast path for the second MXU pass (extra rounding).
        au = au.astype(bt.dtype)
    else:
        bt = bt.astype(jnp.float32)
    o_ref[...] = jnp.dot(au, bt,
                         preferred_element_type=jnp.float32).astype(o_ref.dtype)


# -----------------------------------------------------------------------------
# Wrapper
# -----------------------------------------------------------------------------
def biaffine_forward(a, b, U, *, path="auto", max_tile_a=512, max_tile_b=512,
                     downcast_intermediate=False):
    """out[n] = a[n] @ U @ b[n].T for a:(B,Sa,D), b:(B,Sb,D), U:(D,D)."""
    B, Sa, D = a.shape
    Bb, Sb, Db = b.shape
    assert Bb == B and Db == D and U.shape == (D, D)

    itemsize = jnp.dtype(a.dtype).itemsize
    out_dtype = a.dtype

    # One-time HBM transpose of b -> (B, D, Sb): b is reused across every Sa
    # tile, so paying this once is cheaper than a per-tile XLU transpose.
    bt = jnp.swapaxes(b, -1, -2)

    # ---------------- small-problem fast path -------------------------------
    per_batch_bytes = (2 * Sa * D + 2 * D * Sb + 2 * Sa * Sb + 2 * D * D) * itemsize
    use_small = (path == "small") or (
        path == "auto" and per_batch_bytes <= 8 * 1024 * 1024
        and Sa <= 1024 and Sb <= 1024)

    if use_small:
        vmem_limit = int(min(max(per_batch_bytes * 1.25, 32 * 1024 * 1024),
                             64 * 1024 * 1024))
        return pl.pallas_call(
            _biaffine_small_kernel,
            out_shape=jax.ShapeDtypeStruct((B, Sa, Sb), out_dtype),
            grid=(B,),
            in_specs=[
                pl.BlockSpec((None, Sa, D), lambda n: (n, 0, 0)),
                pl.BlockSpec((None, D, Sb), lambda n: (n, 0, 0)),
                pl.BlockSpec((D, D), lambda n: (0, 0)),
            ],
            out_specs=pl.BlockSpec((None, Sa, Sb), lambda n: (n, 0, 0)),
            compiler_params=pltpu.CompilerParams(
                dimension_semantics=("parallel",),
                vmem_limit_bytes=vmem_limit,
            ),
        )(a, bt, U)

    # ---------------- tiled path ---------------------------------------------
    # Target full-height MXU tiles; never collapse to tiny divisors. Ragged
    # Sa/Sb tails are handled by Pallas' boundary-block masking (no jnp.pad).
    tsa = min(max_tile_a, _round_up(Sa, 256))   # multiple of 256 (>= bf16/int8 align)
    tsb = min(max_tile_b, _round_up(Sb, 128))   # lane-dense output stores

    grid = (B, pl.cdiv(Sa, tsa), pl.cdiv(Sb, tsb))

    b_itemsize = jnp.dtype(b.dtype).itemsize
    u_itemsize = jnp.dtype(U.dtype).itemsize
    footprint = (2 * tsa * D * itemsize                       # a tiles (2-buf)
                 + 2 * D * tsb * b_itemsize                   # b^T tiles (2-buf)
                 + 2 * tsa * tsb * jnp.dtype(out_dtype).itemsize  # out tiles
                 + 2 * D * D * u_itemsize                     # U (conservative 2x)
                 + tsa * D * 4)                               # a@U f32 scratch
    vmem_limit = int(min(max(footprint * 1.25, 32 * 1024 * 1024),
                         64 * 1024 * 1024))

    kernel = functools.partial(
        _biaffine_tiled_kernel,
        downcast=bool(downcast_intermediate) and a.dtype != jnp.float32,
    )

    return pl.pallas_call(
        kernel,
        out_shape=jax.ShapeDtypeStruct((B, Sa, Sb), out_dtype),
        grid=grid,
        in_specs=[
            # a: constant along the Sb axis -> kept resident, not re-fetched.
            pl.BlockSpec((None, tsa, D), lambda n, i, k: (n, i, 0)),
            # b^T: streamed along the innermost (Sb) axis.
            pl.BlockSpec((None, D, tsb), lambda n, i, k: (n, 0, k)),
            # U: constant index -> fetched once, VMEM-resident for whole grid.
            pl.BlockSpec((D, D), lambda n, i, k: (0, 0)),
        ],
        out_specs=pl.BlockSpec((None, tsa, tsb), lambda n, i, k: (n, i, k)),
        scratch_shapes=[pltpu.VMEM((tsa, D), jnp.float32)],
        compiler_params=pltpu.CompilerParams(
            # batch / Sa-tile axes may split across v7x's two TensorCores; the
            # Sb axis must stay sequential per core (a@U scratch dependency).
            dimension_semantics=("parallel", "parallel", "arbitrary"),
            vmem_limit_bytes=vmem_limit,
        ),
    )(a, bt, U)


def reference_biaffine(a, b, U):
    au = jnp.matmul(a, U, precision=jax.lax.Precision.HIGHEST)
    return jnp.matmul(au, jnp.swapaxes(b, -1, -2),
                      precision=jax.lax.Precision.HIGHEST)


if __name__ == "__main__":
    # Exact f32 matmuls everywhere so the check isn't dominated by default
    # reduced-precision MXU rounding.
    jax.config.update("jax_default_matmul_precision", "highest")

    key = jax.random.PRNGKey(0)
    k_a, k_b, k_u = jax.random.split(key, 3)

    # --- Test 1: module-scale shapes (batch=2, seq=8, d_model=32) -> small path.
    B, Sa, Sb, D = 2, 8, 8, 32
    a = jax.random.normal(k_a, (B, Sa, D), dtype=jnp.float32)
    b = jax.random.normal(k_b, (B, Sb, D), dtype=jnp.float32)
    lim = float(jnp.sqrt(6.0 / (D + D)))   # xavier_uniform bound for (D, D)
    U = jax.random.uniform(k_u, (D, D), jnp.float32, -lim, lim)

    out = jax.block_until_ready(biaffine_forward(a, b, U))
    ref = reference_biaffine(a, b, U)
    assert out.shape == (B, Sa, Sb)
    assert jnp.allclose(out, ref, atol=5e-4, rtol=5e-4), "small-path mismatch"

    # --- Test 2: force the tiled path (scratch reuse + ragged Sb boundary tile).
    B2, Sa2, Sb2, D2 = 2, 512, 640, 128
    k_a2, k_b2, k_u2 = jax.random.split(jax.random.PRNGKey(0), 3)
    a2 = jax.random.normal(k_a2, (B2, Sa2, D2), dtype=jnp.float32)
    b2 = jax.random.normal(k_b2, (B2, Sb2, D2), dtype=jnp.float32)
    lim2 = float(jnp.sqrt(6.0 / (D2 + D2)))
    U2 = jax.random.uniform(k_u2, (D2, D2), jnp.float32, -lim2, lim2)

    out2 = jax.block_until_ready(biaffine_forward(a2, b2, U2, path="tiled"))
    ref2 = reference_biaffine(a2, b2, U2)
    assert out2.shape == (B2, Sa2, Sb2)
    assert jnp.allclose(out2, ref2, atol=5e-4, rtol=5e-4), "tiled-path mismatch"

    print("KERNEL_OK")
</pallas_src>

<mosaic_0001>
module attributes {stable_mosaic.version = 11 : i64} {
  func.func @_biaffine_small_kernel(%arg0: i32, %arg1: memref<1x8x32xf32, #tpu.memory_space<vmem>>, %arg2: memref<1x32x8xf32, #tpu.memory_space<vmem>>, %arg3: memref<32x32xf32, #tpu.memory_space<vmem>>, %arg4: memref<1x8x8xf32, #tpu.memory_space<vmem>>) attributes {dimension_semantics = [#tpu.dimension_semantics<parallel>], iteration_bounds = array<i64: 2>, scalar_prefetch = 0 : i64, scratch_operands = 0 : i64, tpu.core_type = #tpu.core_type<tc>, window_params = [{transform_indices = @transform_0, window_bounds = array<i64: 1, 8, 32>}, {transform_indices = @transform_1, window_bounds = array<i64: 1, 32, 8>}, {pipeline_mode = #tpu.pipeline_mode<synchronous>, transform_indices = @transform_2, window_bounds = array<i64: 32, 32>}, {transform_indices = @transform_3, window_bounds = array<i64: 1, 8, 8>}]} {
    %c0 = arith.constant 0 : index
    %c0_0 = arith.constant 0 : index
    %c0_1 = arith.constant 0 : index
    %0 = vector.load %arg1[%c0, %c0_0, %c0_1] : memref<1x8x32xf32, #tpu.memory_space<vmem>>, vector<1x8x32xf32>
    %1 = vector.shape_cast %0 : vector<1x8x32xf32> to vector<8x32xf32>
    %c0_2 = arith.constant 0 : index
    %c0_3 = arith.constant 0 : index
    %2 = vector.load %arg3[%c0_2, %c0_3] : memref<32x32xf32, #tpu.memory_space<vmem>>, vector<32x32xf32>
    %cst = arith.constant dense<0.000000e+00> : vector<8x32xf32>
    %3 = tpu.matmul %1, %2, %cst {dimension_numbers = #tpu.dot_dimension_numbers<[1], [0], [0], [1], [0, 0, 1, 1], [], []>, precision = #tpu.contract_precision<fp32>} : vector<8x32xf32>, vector<32x32xf32>, vector<8x32xf32> -> vector<8x32xf32>
    %c0_4 = arith.constant 0 : index
    %c0_5 = arith.constant 0 : index
    %c0_6 = arith.constant 0 : index
    %4 = vector.load %arg2[%c0_4, %c0_5, %c0_6] : memref<1x32x8xf32, #tpu.memory_space<vmem>>, vector<1x32x8xf32>
    %5 = vector.shape_cast %4 : vector<1x32x8xf32> to vector<32x8xf32>
    %cst_7 = arith.constant dense<0.000000e+00> : vector<8x8xf32>
    %6 = tpu.matmul %3, %5, %cst_7 {dimension_numbers = #tpu.dot_dimension_numbers<[1], [0], [0], [1], [0, 0, 1, 1], [], []>, precision = #tpu.contract_precision<fp32>} : vector<8x32xf32>, vector<32x8xf32>, vector<8x8xf32> -> vector<8x8xf32>
    %c0_8 = arith.constant 0 : index
    %c0_9 = arith.constant 0 : index
    %c0_10 = arith.constant 0 : index
    %7 = vector.load %arg4[%c0_8, %c0_9, %c0_10] : memref<1x8x8xf32, #tpu.memory_space<vmem>>, vector<1x8x8xf32>
    %8 = vector.shape_cast %7 : vector<1x8x8xf32> to vector<8x8xf32>
    %9 = vector.shape_cast %6 : vector<8x8xf32> to vector<1x8x8xf32>
    tpu.vector_store %arg4[%c0_8, %c0_9, %c0_10], %9 {strides = array<i32>} : memref<1x8x8xf32, #tpu.memory_space<vmem>>, vector<1x8x8xf32>,
    return
  }
  func.func @transform_0(%arg0: i32) -> (i32, i32, i32) {
    %c0_i32 = arith.constant 0 : i32
    %c0_i32_0 = arith.constant 0 : i32
    %c0_i32_1 = arith.constant 0 : i32
    return %arg0, %c0_i32, %c0_i32_0 : i32, i32, i32
  }
  func.func @transform_1(%arg0: i32) -> (i32, i32, i32) {
    %c0_i32 = arith.constant 0 : i32
    %c0_i32_0 = arith.constant 0 : i32
    %c0_i32_1 = arith.constant 0 : i32
    return %arg0, %c0_i32, %c0_i32_0 : i32, i32, i32
  }
  func.func @transform_2(%arg0: i32) -> (i32, i32) {
    %c0_i32 = arith.constant 0 : i32
    %c0_i32_0 = arith.constant 0 : i32
    %c0_i32_1 = arith.constant 0 : i32
    return %c0_i32, %c0_i32_0 : i32, i32
  }
  func.func @transform_3(%arg0: i32) -> (i32, i32, i32) {
    %c0_i32 = arith.constant 0 : i32
    %c0_i32_0 = arith.constant 0 : i32
    %c0_i32_1 = arith.constant 0 : i32
    return %arg0, %c0_i32, %c0_i32_0 : i32, i32, i32
  }
}

</mosaic_0001>

<bundles_post_ra>
// kernel: tpu_custom_call.1
= control target key start
LH: loop header
LB: loop body
LE: loop exit
PB: predicated region body
PF: predicated region fallthrough
CT: control target
= control target key end

     0   :  { %8 = vsyncpa [#allocation3], 0  ;;  %s1865_s0 = inlined_call_operand.vmem [shape: f32[2,8,32], index: 0, kind: input, shape index: {}]   ;;  %s1866_s1 = inlined_call_operand.vmem [shape: f32[2,32,8], index: 1, kind: input, shape index: {}]   ;;  %s1867_s2 = inlined_call_operand.vmem [shape: f32[32,32], index: 2, kind: input, shape index: {}]   ;;  %s1868_s3 = inlined_call_operand.hbm [shape: f32[2,8,8], index: 3, kind: output, shape index: {}]  }
   0x1   :  { %10 = vsyncpa [#allocation3 + $0x1], 0  ;;  %s1686_s12 = smov 0   ;;  %s1688_s13 = smov 0  }
   0x2   :  { %s1690_s14 = smov 0   ;;  %s1692_s15 = smov 0  }
   0x3 LB: > { %s1707_s16 = sadd.s32 4294967295, %s1660_s15   ;;  %s1259_s17 = sadd.s32 4294967294, %s1660_s15   ;;  %s1660_s15 = sphi %s1692_s15, %s1874_s15   ;;  %s1656_s14 = sphi %s1690_s14, %s1873_s14   ;;  %s1652_s13 = sphi %s1688_s13, %s1872_s13   ;;  %s1648_s12 = sphi %s1686_s12, %s1871_s12  }
   0x4   : > { %s1711_s18 = sadd.s32 1, %s1660_s15   ;;  %s96_s19 = sadd.s32 1, %s1656_s14 }
   0x5   : > { %s93_s20 = ssub.s32 %s1660_s15, %s1711_s18  ;;  %p106_p0 = scmp.ne.s32.totalorder %s1656_s14, %s1652_s13 }
   0x6   : > { %p94_p1 = scmp.eq.s32.totalorder %s93_s20, 0  ;;  %p107_p2 = scmp.eq.s32.totalorder %s1707_s16, 1 }
   0x7   : > { %p112_p3 = scmp.ne.s32.totalorder %s1652_s13, %s1648_s12  ;;  %p113_p4 = scmp.eq.s32.totalorder %s1259_s17, 1 }
   0x8   : > { %s1722_s21 = scalar_select %p94_p1, %s1656_s14, %s96_s19  }
   0x9   : > { %p1724_p5 = por %p107_p2, %p106_p0  ;;  %p1728_p6 = por %p113_p4, %p112_p3 }
   0xa   : > { %p1262_p7 = scmp.ge.s32.totalorder %s1660_s15, 1  ;;  %p149_p8 = scmp.lt.s32.totalorder %s1660_s15, 3 }
   0xc   : > { %p150_p9 = pnand %p1262_p7, %p149_p8 }
   0xd   : > { %v187_v0 = vld [vmem:[%s1867_s2] sm:$0xff] (!%p150_p9)  ;;  %v188_v1 = vld [vmem:[%s1867_s2 + $0x8] sm:$0xff] (!%p150_p9)  ;;  %v189_v2 = vld [vmem:[%s1867_s2 + $0x10] sm:$0xff] (!%p150_p9)  ;;  %v1662_v3 = vmov (!%p150_p9), 0.0|0.0   ;;  %vm1663_vm0 = vmmov (!%p150_p9), 0   ;;  %v1664_v8 = vmov (!%p150_p9), 0.0  }
   0xe   : > { %153 = sbr.rel (%p150_p9) target bundleno = 566 (0x236), region = 32  ;;  %1464 = vmatprep.subr.bf16.mxu0 (!%p150_p9), %v1662_v3  ;;  %v196_v4 = vand.u32 (!%p150_p9), 4294901760, %v187_v0  ;;  %v199_v5 = vand.u32 (!%p150_p9), 4294901760, %v188_v1  ;;  %v190_v6 = vld [vmem:[%s1867_s2 + $0x18] sm:$0xff] (!%p150_p9)  ;;  %v202_v7 = vand.u32 (!%p150_p9), 4294901760, %v189_v2  ;;  %1340 = vmatprep.mubr.msk.f32.mxu0 (!%p150_p9), %vm1663_vm0, %v1664_v8  ;;  %p177_p10 = scmp.lt.s32.totalorder (!%p150_p9), %s1707_s16, 1 }
   0xf   : > { %v205_v9 = vand.u32 (!%p150_p9), 4294901760, %v190_v6  ;;  %1500 = vmatprep.subr.bf16.mxu1 (!%p150_p9), %v1662_v3  ;;  %1406 = vmatprep.mubr.msk.f32.mxu1 (!%p150_p9), %vm1663_vm0, %v1664_v8  ;;  %vm191_vm1 = vcmask (!%p150_p9), 261120   ;;  %s174_s20 = sand.u32 (!%p150_p9), 1, %s1652_s13   ;;  %s1268_s25 = sshll.u32 (!%p150_p9), %s1707_s16, 7  ;;  %vm1172_vm2 = vcmask (!%p150_p9), 64512  }
  0x10   : > { %v1753_v10 = vpack.c.bf16 (!%p150_p9), %v199_v5, %v196_v4  ;;  %v276_v11 = vsub.f32 (!%p150_p9), %v187_v0, %v196_v4  ;;  %v283_v12 = vsub.f32 (!%p150_p9), %v188_v1, %v199_v5  ;;  %v290_v13 = vsub.f32 (!%p150_p9), %v189_v2, %v202_v7  ;;  %s1263_s24 = sshll.u32 (!%p150_p9), %s174_s20, 3  ;;  %s1823_s30 = scalar_lea.hbm (!%p150_p9), %s1868_s3, %s1268_s25 }
  0x11   : > { %v297_v14 = vsub.f32 (!%p150_p9), %v190_v6, %v205_v9  ;;  %v1468_v15 = vpack.c.bf16 (!%p150_p9), %v205_v9, %v202_v7  ;;  %s176_s26 = scalar_lea.vmem (!%p150_p9), [#allocation2], %s1263_s24  ;;  %s1175_s4 = scalar_lea.sflag (!%p150_p9), [#allocation3], %s174_s20 }
  0x12   : > { %1466 = vmatpush3.bf16.msra.mxu0 (!%p150_p9), %v1753_v10  ;;  %v277_v16 = vand.u32 (!%p150_p9), 4294901760, %v276_v11  ;;  %v284_v17 = vand.u32 (!%p150_p9), 4294901760, %v283_v12  ;;  %v291_v19 = vand.u32 (!%p150_p9), 4294901760, %v290_v13  ;;  %v1477_v37 = vpack.c.bf16 (!%p150_p9), %v283_v12, %v276_v11  ;;  %s1188_s27 = sshll.u32 (!%p150_p9), %s176_s26, 4  ;;  %s1825_s27 = int_to_ptr.vmem [resolvable:$true] %s1188_s27 }
  0x13   : > { %1467 = vmatprep.subr.bf16.mxu0 (!%p150_p9), %v1662_v3  ;;  %v298_v23 = vand.u32 (!%p150_p9), 4294901760, %v297_v14  ;;  %v1480_v38 = vpack.c.bf16 (!%p150_p9), %v297_v14, %v290_v13 }
  0x14   : > { %v278_v21 = vsub.f32 (!%p150_p9), %v276_v11, %v277_v16  ;;  %v285_v22 = vsub.f32 (!%p150_p9), %v283_v12, %v284_v17  ;;  %v292_v28 = vsub.f32 (!%p150_p9), %v290_v13, %v291_v19  ;;  %v1489_v39 = vpack.c.bf16 (!%p150_p9), %v284_v17, %v277_v16 }
  0x15   : > { %s1756_s5 = scalar_select %p177_p10, %s1707_s16, 1  ;;  %v299_v29 = vsub.f32 %v297_v14, %v298_v23  ;;  %v1492_v40 = vpack.c.bf16 %v298_v23, %v291_v19 }
  0x16   : > { %1469 = vmatpush3.bf16.msra.mxu0 %v1468_v15  ;;  %v279_v26 = vand.u32 4294901760, %v278_v21  ;;  %v286_v27 = vand.u32 4294901760, %v285_v22  ;;  %v293_v33 = vand.u32 4294901760, %v292_v28  ;;  %s1665_s16 = smov [#allocation2]  }
  0x17   : > { %s1264_s6 = sshll.u32 %s1756_s5, 3  ;;  %1470 = vmatprep.subr.bf16.mxu0 %v1662_v3  ;;  %v300_v34 = vand.u32 4294901760, %v299_v29  ;;  %s1271_s10 = sshll.u32 %s1756_s5, 5 }
  0x18   : > { %s180_s9 = scalar_lea.vmem %s1865_s0, %s1264_s6  ;;  %v1471_v32 = vpack.c.bf16 %v286_v27, %v279_v26  ;;  %s185_s19 = scalar_lea.vmem %s1866_s1, %s1271_s10 }
  0x19   : > { %v186_v18 = vld [vmem:[%s180_s9] sm:$0xff]  ;;  %v1474_v36 = vpack.c.bf16 %v300_v34, %v293_v33  ;;  %v681_v42 = vld [vmem:[%s185_s19 + $0x8] sm:$0xff]  ;;  %v682_v48 = vld [vmem:[%s185_s19 + $0x10] sm:$0xff]  ;;  %s1598_s5 = scalar_lea.vmem %s1825_s27, 128  ;;  %s1602_s6 = sshll.u32 %s1665_s16, 4  ;;  %s1603_s6 = int_to_ptr.vmem [resolvable:$false] %s1602_s6 }
  0x1a   : > { %v193_v20 = vsel %vm191_vm1, %v186_v18, 0  ;;  %v680_v41 = vld [vmem:[%s185_s19] sm:$0xff]  ;;  %v691_v44 = vand.u32 4294901760, %v681_v42  ;;  %v683_v49 = vld [vmem:[%s185_s19 + $0x18] sm:$0xff]  ;;  %v694_v50 = vand.u32 4294901760, %v682_v48  ;;  %p1599_p11 = scmp.ne.s32.totalorder %s1825_s27, %s1598_s5  ;;  %s1604_s7 = scalar_lea.vmem %s1603_s6, 256 }
  0x1b   : > { %v264_v24 = vand.u32 4294901760, %v193_v20  ;;  %v688_v43 = vand.u32 4294901760, %v680_v41  ;;  %v697_v51 = vand.u32 4294901760, %v683_v49  ;;  %p1605_p0 = scmp.lt.s32.totalorder %s1825_s27, %s1603_s6  ;;  %p1606_p1 = scmp.lt.s32.totalorder %s1604_s7, %s1598_s5 }
  0x1c   : > { %v775_v47 = vsub.f32 %v681_v42, %v691_v44  ;;  %v782_v55 = vsub.f32 %v682_v48, %v694_v50  ;;  %p1600_p12 = pnand %p1599_p11, %p1724_p5 }
  0x1d   : > { %v265_v25 = vsub.f32 %v193_v20, %v264_v24  ;;  %v1791_v45 = vpack.c.bf16 %v691_v44, %v688_v43  ;;  %v768_v46 = vsub.f32 %v680_v41, %v688_v43  ;;  %v1504_v54 = vpack.c.bf16 %v697_v51, %v694_v50  ;;  %p1607_p2 = por %p1606_p1, %p1605_p0 }
  0x1e   : > { %v776_v53 = vand.u32 4294901760, %v775_v47  ;;  %v789_v56 = vsub.f32 %v683_v49, %v697_v51  ;;  %v783_v60 = vand.u32 4294901760, %v782_v55  ;;  %p1601_p13 = pneg %p1600_p12 }
  0x1f   : > { %v266_v30 = vand.u32 4294901760, %v265_v25  ;;  %1502 = vmatpush3.bf16.msra.mxu1 %v1791_v45  ;;  %v769_v52 = vand.u32 4294901760, %v768_v46  ;;  %v1513_v6 = vpack.c.bf16 %v775_v47, %v768_v46 }
  0x20   : > { %1503 = vmatprep.subr.bf16.mxu1 %v1662_v3  ;;  %v777_v58 = vsub.f32 %v775_v47, %v776_v53  ;;  %v790_v61 = vand.u32 4294901760, %v789_v56  ;;  %v784_v63 = vsub.f32 %v782_v55, %v783_v60  ;;  %v1516_v7 = vpack.c.bf16 %v789_v56, %v782_v55  ;;  %p1608_p3 = pnand %p1607_p2, %p1601_p13 }
  0x21   : > { %v267_v31 = vsub.f32 %v265_v25, %v266_v30  ;;  %v770_v57 = vsub.f32 %v768_v46, %v769_v52  ;;  %v1525_v9 = vpack.c.bf16 %v776_v53, %v769_v52 }
  0x22   : > { %v778_v62 = vand.u32 4294901760, %v777_v58  ;;  %v791_v0 = vsub.f32 %v789_v56, %v790_v61  ;;  %v785_v2 = vand.u32 4294901760, %v784_v63 }
  0x23   : > { %v268_v35 = vand.u32 4294901760, %v267_v31  ;;  %1505 = vmatpush3.bf16.msra.mxu1 %v1504_v54  ;;  %v771_v59 = vand.u32 4294901760, %v770_v57 }
  0x24   : > { %1506 = vmatprep.subr.bf16.mxu1 %v1662_v3  ;;  %v792_v4 = vand.u32 4294901760, %v791_v0 }
  0x25   : > { %1341 = vmatmul.mubr.f32.vlgmr.msra.gmra.mrb[0].mxu0 %v268_v35  ;;  %v1507_v1 = vpack.c.bf16 %v778_v62, %v771_v59 }
  0x26   : > { %1472 = vmatpush3.bf16.msra.mxu0 %v1471_v32  ;;  %1351 = vmatprep.mubr.msk.f32.mxu0 %vm1663_vm0, %v1664_v8  ;;  %v1510_v5 = vpack.c.bf16 %v792_v4, %v785_v2 }
  0x27   : > { %1473 = vmatprep.subr.bf16.mxu0 %v1662_v3 }
  0x2a   : > { %1475 = vmatpush3.bf16.msra.mxu0 %v1474_v36 }
  0x2b   : > { %1476 = vmatprep.subr.bf16.mxu0 %v1662_v3 }
  0x2d   : > { %1352 = vmatmul.mubr.f32.vlgmr.msra.gmra.mrb[0].mxu0 %v264_v24 }
  0x2e   : > { %1478 = vmatpush3.bf16.msra.mxu0 %v1477_v37  ;;  %1362 = vmatprep.mubr.msk.f32.mxu0 %vm1663_vm0, %v1664_v8 }
  0x2f   : > { %1479 = vmatprep.subr.bf16.mxu0 %v1662_v3 }
  0x32   : > { %1481 = vmatpush3.bf16.msra.mxu0 %v1480_v38 }
  0x33   : > { %1482 = vmatprep.subr.bf16.mxu0 %v1662_v3 }
  0x35   : > { %1363 = vmatmul.mubr.f32.vlgmr.msra.gmra.mrb[0].mxu0 %v265_v25 }
  0x36   : > { %1484 = vmatpush3.bf16.msra.mxu0 %v1753_v10  ;;  %1373 = vmatprep.mubr.msk.f32.mxu0 %vm1663_vm0, %v1664_v8 }
  0x37   : > { %1485 = vmatprep.subr.bf16.mxu0 %v1662_v3 }
  0x3a   : > { %1487 = vmatpush3.bf16.msra.mxu0 %v1468_v15 }
  0x3b   : > { %1488 = vmatprep.subr.bf16.mxu0 %v1662_v3 }
  0x3d   : > { %1374 = vmatmul.mubr.f32.vlgmr.msra.gmra.mrb[0].mxu0 %v266_v30 }
  0x3e   : > { %1490 = vmatpush3.bf16.msra.mxu0 %v1489_v39  ;;  %1384 = vmatprep.mubr.msk.f32.mxu0 %vm1663_vm0, %v1664_v8 }
  0x3f   : > { %1491 = vmatprep.subr.bf16.mxu0 %v1662_v3 }
  0x42   : > { %1493 = vmatpush3.bf16.msra.mxu0 %v1492_v40 }
  0x43   : > { %1494 = vmatprep.subr.bf16.mxu0 %v1662_v3 }
  0x45   : > { %1385 = vmatmul.mubr.f32.vlgmr.msra.gmra.mrb[0].mxu0 %v264_v24 }
  0x46   : > { %1496 = vmatpush3.bf16.msra.mxu0 %v1753_v10  ;;  %1395 = vmatprep.mubr.msk.f32.mxu0 %vm1663_vm0, %v1664_v8  ;;  %v1528_v10 = vpack.c.bf16 %v790_v61, %v783_v60 }
  0x47   : > { %1497 = vmatprep.subr.bf16.mxu0 %v1662_v3 }
  0x4a   : > { %1499 = vmatpush3.bf16.msra.mxu0 %v1468_v15 }
  0x4d   : > { %1396 = vmatmul.mubr.f32.vlgmr.msra.gmra.mrb[0].mxu0 %v264_v24 }
 0x120   : > { %v676_v11 = vpop.f32.mrb[0].mxu0 }
 0x121   : > { %v685_v12 = vsel %vm191_vm1, %v676_v11, 0  ;;  %v1397_v13 = vpop.f32.mrb[1].mxu0 }
 0x122   : > { %v756_v14 = vand.u32 4294901760, %v685_v12 }
 0x124   : > { %v757_v15 = vsub.f32 %v685_v12, %v756_v14 }
 0x126   : > { %v758_v16 = vand.u32 4294901760, %v757_v15 }
 0x128   : > { %v759_v17 = vsub.f32 %v757_v15, %v758_v16 }
 0x12a   : > { %v760_v18 = vand.u32 4294901760, %v759_v17 }
 0x12c   : > { %1407 = vmatmul.mubr.f32.vlgmr.msra.gmra.mrb[0].mxu1 %v760_v18 }
 0x12d   : > { %1508 = vmatpush3.bf16.msra.mxu1 %v1507_v1  ;;  %1417 = vmatprep.mubr.msk.f32.mxu1 %vm1663_vm0, %v1664_v8 }
 0x12e   : > { %1509 = vmatprep.subr.bf16.mxu1 %v1662_v3 }
 0x131   : > { %1511 = vmatpush3.bf16.msra.mxu1 %v1510_v5 }
 0x132   : > { %1512 = vmatprep.subr.bf16.mxu1 %v1662_v3 }
 0x134   : > { %1418 = vmatmul.mubr.f32.vlgmr.msra.gmra.mrb[0].mxu1 %v756_v14 }
 0x135   : > { %1514 = vmatpush3.bf16.msra.mxu1 %v1513_v6  ;;  %1428 = vmatprep.mubr.msk.f32.mxu1 %vm1663_vm0, %v1664_v8 }
 0x136   : > { %1515 = vmatprep.subr.bf16.mxu1 %v1662_v3 }
 0x139   : > { %1517 = vmatpush3.bf16.msra.mxu1 %v1516_v7 }
 0x13a   : > { %1518 = vmatprep.subr.bf16.mxu1 %v1662_v3 }
 0x13c   : > { %1429 = vmatmul.mubr.f32.vlgmr.msra.gmra.mrb[0].mxu1 %v757_v15 }
 0x13d   : > { %1520 = vmatpush3.bf16.msra.mxu1 %v1791_v45  ;;  %1439 = vmatprep.mubr.msk.f32.mxu1 %vm1663_vm0, %v1664_v8 }
 0x13e   : > { %1521 = vmatprep.subr.bf16.mxu1 %v1662_v3 }
 0x141   : > { %1523 = vmatpush3.bf16.msra.mxu1 %v1504_v54 }
 0x142   : > { %1524 = vmatprep.subr.bf16.mxu1 %v1662_v3 }
 0x144   : > { %1440 = vmatmul.mubr.f32.vlgmr.msra.gmra.mrb[0].mxu1 %v758_v16 }
 0x145   : > { %1526 = vmatpush3.bf16.msra.mxu1 %v1525_v9  ;;  %1450 = vmatprep.mubr.msk.f32.mxu1 %vm1663_vm0, %v1664_v8 }
 0x146   : > { %1527 = vmatprep.subr.bf16.mxu1 %v1662_v3 }
 0x149   : > { %1529 = vmatpush3.bf16.msra.mxu1 %v1528_v10 }
 0x14a   : > { %1530 = vmatprep.subr.bf16.mxu1 %v1662_v3 }
 0x14c   : > { %1451 = vmatmul.mubr.f32.vlgmr.msra.gmra.mrb[0].mxu1 %v756_v14 }
 0x14d   : > { %1532 = vmatpush3.bf16.msra.mxu1 %v1791_v45  ;;  %1461 = vmatprep.mubr.msk.f32.mxu1 %vm1663_vm0, %v1664_v8 }
 0x14e   : > { %1533 = vmatprep.subr.bf16.mxu1 %v1662_v3 }
 0x151   : > { %1535 = vmatpush3.bf16.msra.mxu1 %v1504_v54 }
 0x154   : > { %1462 = vmatmul.mubr.f32.vlgmr.msra.gmra.mrb[0].mxu1 %v756_v14 }
 0x227   : > { %v1168_v3 = vpop.f32.mrb[0].mxu1 }
 0x228   : > { %1173 = vst.msk [vmem:[%s176_s26] sm:$0xff] %vm1172_vm2, %v1168_v3  ;;  %v1463_v8 = vpop.f32.mrb[1].mxu1 }
 0x229   : > { %1611 = shalt.err (!%p1608_p3)
}
 0x22a   : > { %s1612_s8 = scalar_lea.hbm %s1823_s30, 128  ;;  %s1616_s11 = scalar_lea.hbm %s1868_s3, 256 }
 0x22b   : > { %p1613_p4 = scmp.ne.s32.totalorder %s1823_s30, %s1612_s8  ;;  %p1617_p9 = scmp.lt.u32.totalorder %s1823_s30, %s1868_s3 }
 0x22c   : > { %p1618_p10 = scmp.lt.u32.totalorder %s1616_s11, %s1612_s8  ;;  %p1620_p12 = scmp.lt.u32.totalorder %s1612_s8, %s1823_s30 }
 0x22d   : > { %p1614_p7 = pnand %p1613_p4, %p1724_p5 }
 0x22e   : > { %p1619_p11 = por %p1618_p10, %p1617_p9 }
 0x22f   : > { %p1615_p8 = pneg %p1614_p7 }
 0x230   : > { %p1621_p13 = por %p1620_p12, %p1619_p11 }
 0x232   : > { %p1622_p0 = pnand %p1621_p13, %p1615_p8 }
 0x234   : > { %1625 = shalt.err (!%p1622_p0)
}
 0x235   : > { %1556 = dma.vmem_to_hbm [thread:$0]  (%p1724_p5), %s1825_s27, 128, %s1823_s30, %s1175_s4  }
 0x236 PF: > { %p1562_p1 = scmp.ge.s32.totalorder %s1660_s15, 2  ;;  %s1200_s20 = sand.u32 1, %s1648_s12  }
 0x237   : > { %s1201_s24 = scalar_lea.sflag [#allocation3], %s1200_s20 }
 0x238   : > { %p1559_p2 = pnand %p1562_p1, %p1728_p6 }
 0x23a   : > { %1643 = dma.done.wait (!%p1559_p2), %s1201_s24, 128  }
 0x23b   : > { %1645 = vsyncadd (!%p1559_p2), %s1201_s24, 4294967168  ;;  %p13_p3 = scmp.ge.s32.totalorder %s1711_s18, 4   ;;  %s1871_s12 = smov %s1652_s13 }
 0x23c   : > { %s1872_s13 = smov %s1656_s14  ;;  %s1873_s14 = smov %s1722_s21 }
 0x23d   : > { %s1874_s15 = smov %s1711_s18  ;;  %15 = sbr.rel (!%p13_p3) target bundleno = 3 (0x3), region = 70 }
 0x244   :  { %1206 = vsyncpa [#allocation3], 1 }
 0x245   :  { %1208 = vsyncpa [#allocation3 + $0x1], 1 }

</bundles_post_ra>
